<compile_context>
chip_gen: v7x
topology: tpu7x:2x2x1
jax: 0.10.0
libtpu: 0.0.40
codegen_flags: <defaults>
</compile_context>

<pallas_src>
import functools

import jax
import jax.numpy as jnp
from jax.experimental import pallas as pl
from jax.experimental.pallas import tpu as pltpu


def _round_up(x, m):
    return ((x + m - 1) // m) * m


def _pick_time_block(T, b_pad, h_pad, max_block_bytes=1 << 20, max_tt=64):
    """Steps per grid iteration: amortize ~0.35us/step, keep X/Y blocks ~<=1MB."""
    per_step = b_pad * h_pad * 2          # bf16 X_emb / Y slab per time step
    tt = max(1, min(max_tt, max_block_bytes // per_step, T))
    return int(tt)


def _pick_n_tile(v_pad):
    for tn in (1024, 512, 256, 128):
        if v_pad % tn == 0:
            return min(tn, v_pad)
    return v_pad


def _vmem_limit(nbytes):
    # nbytes already counts double buffering; add margin, stay well under the
    # smallest physical VMEM (v7x: 64 MiB).
    return int(min(max(2 * nbytes + (1 << 20), 4 << 20), 48 << 20))


def rnn_recurrent_kernel(xemb_ref, h0_ref, whh_ref, y_ref, state_ref,
                         *, tt_steps, t_real, t_padded):
    """One grid step = `tt_steps` recurrence steps; the grid axis is sequential.

    xemb_ref : (TT, Bp, Hp) bf16  streamed X one-hot @ W_ih^T (+ folded biases)
    whh_ref  : (Hp, Hp)     bf16  W_hh^T, constant block index
    y_ref    : (TT, Bp, Hp) bf16  Y slice for this time block
    state_ref: (Bp, Hp)     f32   resident hidden-state carry (constant block)
    """
    tblk = pl.program_id(0)

    @pl.when(tblk == 0)
    def _():
        state_ref[...] = h0_ref[...]

    whh = whh_ref[...]                                     # resident (Hp, Hp) bf16

    def step(tt, h_prev):
        pre = (xemb_ref[tt].astype(jnp.float32)
               + jnp.dot(h_prev.astype(jnp.bfloat16), whh,
                         preferred_element_type=jnp.float32))
        h_new = jnp.tanh(pre)
        y_ref[tt] = h_new.astype(y_ref.dtype)
        if t_padded == t_real:                             # no time padding: no mask
            return h_new
        t = tblk * tt_steps + tt
        return jnp.where(t < t_real, h_new, h_prev)        # padded steps don't advance

    h_last = jax.lax.fori_loop(0, tt_steps, step, state_ref[...], unroll=True)
    state_ref[...] = h_last


def projection_kernel(y_ref, wlin_ref, blin_ref, out_ref):
    """Lane-dense (tm, Hp) x (Hp, tn) bf16 GEMM + bias, f32 accumulation."""
    out_ref[...] = (
        jnp.dot(y_ref[...], wlin_ref[...], preferred_element_type=jnp.float32)
        + blin_ref[...])


def rnn_model_forward(inputs, h0, params):
    """inputs: (B, T) int32 tokens; h0: (1, B, H) initial state."""
    w_ih, b_ih, w_hh, b_hh, w_lin, b_lin = params
    H, V = w_ih.shape
    B, T = inputs.shape

    B_pad = _round_up(max(B, 8), 8)       # sublane multiple
    H_pad = _round_up(H, 128)             # lane multiple
    V_pad = _round_up(V, 128)             # lane multiple
    TT = _pick_time_block(T, B_pad, H_pad)
    T_pad = _round_up(T, TT)

    f32 = jnp.float32

    def pad2(m, r, c):
        return jnp.zeros((r, c), f32).at[:m.shape[0], :m.shape[1]].set(m.astype(f32))

    # --- glue: pad / transpose / fold parameters (zero padding keeps numerics) ---
    # Embedding table with both RNN biases folded in: row v = W_ih^T[v] + b_ih + b_hh
    emb = pad2(w_ih.T + (b_ih + b_hh)[None, :], V, H_pad).astype(jnp.bfloat16)  # (V,Hp)
    whhT = pad2(w_hh.T, H_pad, H_pad).astype(jnp.bfloat16)                      # (Hp,Hp)
    wlinT = pad2(w_lin.T, H_pad, V_pad).astype(jnp.bfloat16)                    # (Hp,Vp)
    blin = pad2(b_lin.reshape(1, V), 1, V_pad)                                  # (1,Vp) f32
    h0p = pad2(h0[0], B_pad, H_pad)                                             # (Bp,Hp) f32

    # Gather hoisted off the serial recurrence: X_emb is built here (parallel XLA
    # gather) and streamed into the recurrent kernel by BlockSpec DMA.
    tok = jnp.zeros((T_pad, B_pad), jnp.int32).at[:T, :B].set(inputs.T.astype(jnp.int32))
    xemb = jnp.take(emb, tok, axis=0)                    # (T_pad, B_pad, H_pad) bf16

    # --- kernel 1: sequential recurrence, TT steps per grid iteration ---
    rec = functools.partial(rnn_recurrent_kernel,
                            tt_steps=TT, t_real=T, t_padded=T_pad)
    xy_blk = TT * B_pad * H_pad * 2
    k1_bytes = 2 * (xy_blk                 # X_emb stream (bf16)
                    + B_pad * H_pad * 4    # h0
                    + H_pad * H_pad * 2    # W_hh^T (bf16)
                    + xy_blk               # Y block (bf16)
                    + B_pad * H_pad * 4)   # state carry
    y_pad, state_pad = pl.pallas_call(
        rec,
        out_shape=(
            jax.ShapeDtypeStruct((T_pad, B_pad, H_pad), jnp.bfloat16),
            jax.ShapeDtypeStruct((B_pad, H_pad), jnp.float32),
        ),
        grid_spec=pltpu.PrefetchScalarGridSpec(
            num_scalar_prefetch=0,
            grid=(T_pad // TT,),
            in_specs=[
                pl.BlockSpec((TT, B_pad, H_pad), lambda i: (i, 0, 0)),   # X_emb
                pl.BlockSpec((B_pad, H_pad), lambda i: (0, 0)),          # h0
                pl.BlockSpec((H_pad, H_pad), lambda i: (0, 0)),          # W_hh^T
            ],
            out_specs=(
                pl.BlockSpec((TT, B_pad, H_pad), lambda i: (i, 0, 0)),   # Y block
                pl.BlockSpec((B_pad, H_pad), lambda i: (0, 0)),          # h_T carry
            ),
        ),
        compiler_params=pltpu.CompilerParams(
            dimension_semantics=("arbitrary",),          # recurrence is sequential
            vmem_limit_bytes=_vmem_limit(k1_bytes)),
    )(xemb, h0p, whhT)

    # --- kernel 2: output projection, 2-D parallel grid, lane-dense 128xN tiles ---
    M = T_pad * B_pad
    tm = 128
    M_pad = _round_up(M, tm)
    tn = _pick_n_tile(V_pad)
    y2d = jnp.zeros((M_pad, H_pad), jnp.bfloat16).at[:M].set(y_pad.reshape(M, H_pad))

    k2_bytes = 2 * (tm * H_pad * 2 + H_pad * tn * 2 + tn * 4 + tm * tn * 4)
    out_pad = pl.pallas_call(
        projection_kernel,
        out_shape=jax.ShapeDtypeStruct((M_pad, V_pad), jnp.float32),
        grid_spec=pltpu.PrefetchScalarGridSpec(
            num_scalar_prefetch=0,
            grid=(M_pad // tm, V_pad // tn),
            in_specs=[
                pl.BlockSpec((tm, H_pad), lambda i, j: (i, 0)),
                pl.BlockSpec((H_pad, tn), lambda i, j: (0, j)),
                pl.BlockSpec((1, tn), lambda i, j: (0, j)),
            ],
            out_specs=pl.BlockSpec((tm, tn), lambda i, j: (i, j)),
        ),
        compiler_params=pltpu.CompilerParams(
            dimension_semantics=("parallel", "parallel"),
            vmem_limit_bytes=_vmem_limit(k2_bytes)),
    )(y2d, wlinT, blin)

    # --- glue: strip padding, restore PyTorch layouts ---
    output = out_pad[:M].reshape(T_pad, B_pad, V_pad)[:T, :B, :V].reshape(T * B, V)
    state = state_pad[:B, :H][None]
    return output, state


def reference_forward(inputs, h0, params):
    w_ih, b_ih, w_hh, b_hh, w_lin, b_lin = params
    vocab = w_ih.shape[1]
    X = jax.nn.one_hot(inputs.T, vocab, dtype=jnp.float32)

    def step(h, x_t):
        h_new = jnp.tanh(x_t @ w_ih.T + b_ih + h @ w_hh.T + b_hh)
        return h_new, h_new

    h_last, Y = jax.lax.scan(step, h0[0], X)
    output = Y.reshape(-1, Y.shape[-1]) @ w_lin.T + b_lin
    return output, h_last[None]


if __name__ == "__main__":
    # Small sizes consistent with the module: batch=2, seq=8, vocab=32, hidden=32.
    B, T, V, H = 2, 8, 32, 32

    key = jax.random.PRNGKey(0)
    ks = jax.random.split(key, 7)
    bound = 1.0 / jnp.sqrt(jnp.float32(H))
    w_ih = jax.random.uniform(ks[0], (H, V), jnp.float32, -bound, bound)
    b_ih = jax.random.uniform(ks[1], (H,), jnp.float32, -bound, bound)
    w_hh = jax.random.uniform(ks[2], (H, H), jnp.float32, -bound, bound)
    b_hh = jax.random.uniform(ks[3], (H,), jnp.float32, -bound, bound)
    w_lin = jax.random.uniform(ks[4], (V, H), jnp.float32, -bound, bound)
    b_lin = jax.random.uniform(ks[5], (V,), jnp.float32, -bound, bound)
    params = (w_ih, b_ih, w_hh, b_hh, w_lin, b_lin)

    inputs = jax.random.randint(ks[6], (B, T), 0, V, dtype=jnp.int32)
    h0 = jnp.zeros((1, B, H), jnp.float32)   # begin_state()

    out, state = rnn_model_forward(inputs, h0, params)
    out = jax.block_until_ready(out)
    state = jax.block_until_ready(state)

    ref_out, ref_state = reference_forward(inputs, h0, params)
    assert out.shape == (T * B, V) and state.shape == (1, B, H)
    # bf16 weights / activations in the matmuls (f32 accumulation) -> looser check.
    assert jnp.allclose(out, ref_out, atol=5e-2, rtol=5e-2)
    assert jnp.allclose(state, ref_state, atol=2e-2, rtol=2e-2)

    print("KERNEL_OK")
</pallas_src>

<mosaic_0001>
module attributes {stable_mosaic.version = 11 : i64} {
  func.func @rnn_recurrent_kernel(%arg0: i32, %arg1: memref<8x8x128xbf16, #tpu.memory_space<vmem>>, %arg2: memref<8x128xf32, #tpu.memory_space<vmem>>, %arg3: memref<128x128xbf16, #tpu.memory_space<vmem>>, %arg4: memref<8x8x128xbf16, #tpu.memory_space<vmem>>, %arg5: memref<8x128xf32, #tpu.memory_space<vmem>>) attributes {dimension_semantics = [#tpu.dimension_semantics<arbitrary>], iteration_bounds = array<i64: 1>, scalar_prefetch = 0 : i64, scratch_operands = 0 : i64, tpu.core_type = #tpu.core_type<tc>, window_params = [{transform_indices = @transform_0, window_bounds = array<i64: 8, 8, 128>}, {pipeline_mode = #tpu.pipeline_mode<synchronous>, transform_indices = @transform_1, window_bounds = array<i64: 8, 128>}, {pipeline_mode = #tpu.pipeline_mode<synchronous>, transform_indices = @transform_2, window_bounds = array<i64: 128, 128>}, {transform_indices = @transform_3, window_bounds = array<i64: 8, 8, 128>}, {pipeline_mode = #tpu.pipeline_mode<synchronous>, transform_indices = @transform_4, window_bounds = array<i64: 8, 128>}]} {
    %c0_i32 = arith.constant 0 : i32
    %0 = arith.cmpi eq, %arg0, %c0_i32 : i32
    %1 = arith.extui %0 : i1 to i32
    %c0_i32_0 = arith.constant 0 : i32
    %2 = arith.cmpi ne, %1, %c0_i32_0 : i32
    scf.if %2 {
      %c0_46 = arith.constant 0 : index
      %c0_47 = arith.constant 0 : index
      %110 = vector.load %arg2[%c0_46, %c0_47] : memref<8x128xf32, #tpu.memory_space<vmem>>, vector<8x128xf32>
      %c0_48 = arith.constant 0 : index
      %c0_49 = arith.constant 0 : index
      %111 = vector.load %arg5[%c0_48, %c0_49] : memref<8x128xf32, #tpu.memory_space<vmem>>, vector<8x128xf32>
      tpu.vector_store %arg5[%c0_48, %c0_49], %110 {strides = array<i32>} : memref<8x128xf32, #tpu.memory_space<vmem>>, vector<8x128xf32>,
    } else {
    }
    %c0 = arith.constant 0 : index
    %c0_1 = arith.constant 0 : index
    %3 = vector.load %arg3[%c0, %c0_1] : memref<128x128xbf16, #tpu.memory_space<vmem>>, vector<128x128xbf16>
    %c0_2 = arith.constant 0 : index
    %c0_3 = arith.constant 0 : index
    %4 = vector.load %arg5[%c0_2, %c0_3] : memref<8x128xf32, #tpu.memory_space<vmem>>, vector<8x128xf32>
    %c0_i32_4 = arith.constant 0 : i32
    %5 = arith.index_cast %c0_i32_4 : i32 to index
    %c0_5 = arith.constant 0 : index
    %c0_6 = arith.constant 0 : index
    %6 = vector.load %arg1[%5, %c0_5, %c0_6] : memref<8x8x128xbf16, #tpu.memory_space<vmem>>, vector<1x8x128xbf16>
    %7 = vector.shape_cast %6 : vector<1x8x128xbf16> to vector<8x128xbf16>
    %8 = arith.extf %7 : vector<8x128xbf16> to vector<8x128xf32>
    %9 = arith.truncf %4 : vector<8x128xf32> to vector<8x128xbf16>
    %cst = arith.constant dense<0.000000e+00> : vector<8x128xf32>
    %10 = tpu.matmul %9, %3, %cst {dimension_numbers = #tpu.dot_dimension_numbers<[1], [0], [0], [1], [0, 0, 1, 1], [], []>} : vector<8x128xbf16>, vector<128x128xbf16>, vector<8x128xf32> -> vector<8x128xf32>
    %11 = arith.addf %8, %10 : vector<8x128xf32>
    %12 = math.tanh %11 : vector<8x128xf32>
    %13 = arith.truncf %12 : vector<8x128xf32> to vector<8x128xbf16>
    %14 = arith.index_cast %c0_i32_4 : i32 to index
    %c0_7 = arith.constant 0 : index
    %c0_8 = arith.constant 0 : index
    %15 = vector.load %arg4[%14, %c0_7, %c0_8] : memref<8x8x128xbf16, #tpu.memory_space<vmem>>, vector<1x8x128xbf16>
    %16 = vector.shape_cast %15 : vector<1x8x128xbf16> to vector<8x128xbf16>
    %17 = vector.shape_cast %13 : vector<8x128xbf16> to vector<1x8x128xbf16>
    tpu.vector_store %arg4[%14, %c0_7, %c0_8], %17 {strides = array<i32>} : memref<8x8x128xbf16, #tpu.memory_space<vmem>>, vector<1x8x128xbf16>,
    %c1_i32 = arith.constant 1 : i32
    %18 = arith.index_cast %c1_i32 : i32 to index
    %c0_9 = arith.constant 0 : index
    %c0_10 = arith.constant 0 : index
    %19 = vector.load %arg1[%18, %c0_9, %c0_10] : memref<8x8x128xbf16, #tpu.memory_space<vmem>>, vector<1x8x128xbf16>
    %20 = vector.shape_cast %19 : vector<1x8x128xbf16> to vector<8x128xbf16>
    %21 = arith.extf %20 : vector<8x128xbf16> to vector<8x128xf32>
    %22 = arith.truncf %12 : vector<8x128xf32> to vector<8x128xbf16>
    %cst_11 = arith.constant dense<0.000000e+00> : vector<8x128xf32>
    %23 = tpu.matmul %22, %3, %cst_11 {dimension_numbers = #tpu.dot_dimension_numbers<[1], [0], [0], [1], [0, 0, 1, 1], [], []>} : vector<8x128xbf16>, vector<128x128xbf16>, vector<8x128xf32> -> vector<8x128xf32>
    %24 = arith.addf %21, %23 : vector<8x128xf32>
    %25 = math.tanh %24 : vector<8x128xf32>
    %26 = arith.truncf %25 : vector<8x128xf32> to vector<8x128xbf16>
    %27 = arith.index_cast %c1_i32 : i32 to index
    %c0_12 = arith.constant 0 : index
    %c0_13 = arith.constant 0 : index
    %28 = vector.load %arg4[%27, %c0_12, %c0_13] : memref<8x8x128xbf16, #tpu.memory_space<vmem>>, vector<1x8x128xbf16>
    %29 = vector.shape_cast %28 : vector<1x8x128xbf16> to vector<8x128xbf16>
    %30 = vector.shape_cast %26 : vector<8x128xbf16> to vector<1x8x128xbf16>
    tpu.vector_store %arg4[%27, %c0_12, %c0_13], %30 {strides = array<i32>} : memref<8x8x128xbf16, #tpu.memory_space<vmem>>, vector<1x8x128xbf16>,
    %c2_i32 = arith.constant 2 : i32
    %31 = arith.index_cast %c2_i32 : i32 to index
    %c0_14 = arith.constant 0 : index
    %c0_15 = arith.constant 0 : index
    %32 = vector.load %arg1[%31, %c0_14, %c0_15] : memref<8x8x128xbf16, #tpu.memory_space<vmem>>, vector<1x8x128xbf16>
    %33 = vector.shape_cast %32 : vector<1x8x128xbf16> to vector<8x128xbf16>
    %34 = arith.extf %33 : vector<8x128xbf16> to vector<8x128xf32>
    %35 = arith.truncf %25 : vector<8x128xf32> to vector<8x128xbf16>
    %cst_16 = arith.constant dense<0.000000e+00> : vector<8x128xf32>
    %36 = tpu.matmul %35, %3, %cst_16 {dimension_numbers = #tpu.dot_dimension_numbers<[1], [0], [0], [1], [0, 0, 1, 1], [], []>} : vector<8x128xbf16>, vector<128x128xbf16>, vector<8x128xf32> -> vector<8x128xf32>
    %37 = arith.addf %34, %36 : vector<8x128xf32>
    %38 = math.tanh %37 : vector<8x128xf32>
    %39 = arith.truncf %38 : vector<8x128xf32> to vector<8x128xbf16>
    %40 = arith.index_cast %c2_i32 : i32 to index
    %c0_17 = arith.constant 0 : index
    %c0_18 = arith.constant 0 : index
    %41 = vector.load %arg4[%40, %c0_17, %c0_18] : memref<8x8x128xbf16, #tpu.memory_space<vmem>>, vector<1x8x128xbf16>
    %42 = vector.shape_cast %41 : vector<1x8x128xbf16> to vector<8x128xbf16>
    %43 = vector.shape_cast %39 : vector<8x128xbf16> to vector<1x8x128xbf16>
    tpu.vector_store %arg4[%40, %c0_17, %c0_18], %43 {strides = array<i32>} : memref<8x8x128xbf16, #tpu.memory_space<vmem>>, vector<1x8x128xbf16>,
    %c3_i32 = arith.constant 3 : i32
    %44 = arith.index_cast %c3_i32 : i32 to index
    %c0_19 = arith.constant 0 : index
    %c0_20 = arith.constant 0 : index
    %45 = vector.load %arg1[%44, %c0_19, %c0_20] : memref<8x8x128xbf16, #tpu.memory_space<vmem>>, vector<1x8x128xbf16>
    %46 = vector.shape_cast %45 : vector<1x8x128xbf16> to vector<8x128xbf16>
    %47 = arith.extf %46 : vector<8x128xbf16> to vector<8x128xf32>
    %48 = arith.truncf %38 : vector<8x128xf32> to vector<8x128xbf16>
    %cst_21 = arith.constant dense<0.000000e+00> : vector<8x128xf32>
    %49 = tpu.matmul %48, %3, %cst_21 {dimension_numbers = #tpu.dot_dimension_numbers<[1], [0], [0], [1], [0, 0, 1, 1], [], []>} : vector<8x128xbf16>, vector<128x128xbf16>, vector<8x128xf32> -> vector<8x128xf32>
    %50 = arith.addf %47, %49 : vector<8x128xf32>
    %51 = math.tanh %50 : vector<8x128xf32>
    %52 = arith.truncf %51 : vector<8x128xf32> to vector<8x128xbf16>
    %53 = arith.index_cast %c3_i32 : i32 to index
    %c0_22 = arith.constant 0 : index
    %c0_23 = arith.constant 0 : index
    %54 = vector.load %arg4[%53, %c0_22, %c0_23] : memref<8x8x128xbf16, #tpu.memory_space<vmem>>, vector<1x8x128xbf16>
    %55 = vector.shape_cast %54 : vector<1x8x128xbf16> to vector<8x128xbf16>
    %56 = vector.shape_cast %52 : vector<8x128xbf16> to vector<1x8x128xbf16>
    tpu.vector_store %arg4[%53, %c0_22, %c0_23], %56 {strides = array<i32>} : memref<8x8x128xbf16, #tpu.memory_space<vmem>>, vector<1x8x128xbf16>,
    %c4_i32 = arith.constant 4 : i32
    %57 = arith.index_cast %c4_i32 : i32 to index
    %c0_24 = arith.constant 0 : index
    %c0_25 = arith.constant 0 : index
    %58 = vector.load %arg1[%57, %c0_24, %c0_25] : memref<8x8x128xbf16, #tpu.memory_space<vmem>>, vector<1x8x128xbf16>
    %59 = vector.shape_cast %58 : vector<1x8x128xbf16> to vector<8x128xbf16>
    %60 = arith.extf %59 : vector<8x128xbf16> to vector<8x128xf32>
    %61 = arith.truncf %51 : vector<8x128xf32> to vector<8x128xbf16>
    %cst_26 = arith.constant dense<0.000000e+00> : vector<8x128xf32>
    %62 = tpu.matmul %61, %3, %cst_26 {dimension_numbers = #tpu.dot_dimension_numbers<[1], [0], [0], [1], [0, 0, 1, 1], [], []>} : vector<8x128xbf16>, vector<128x128xbf16>, vector<8x128xf32> -> vector<8x128xf32>
    %63 = arith.addf %60, %62 : vector<8x128xf32>
    %64 = math.tanh %63 : vector<8x128xf32>
    %65 = arith.truncf %64 : vector<8x128xf32> to vector<8x128xbf16>
    %66 = arith.index_cast %c4_i32 : i32 to index
    %c0_27 = arith.constant 0 : index
    %c0_28 = arith.constant 0 : index
    %67 = vector.load %arg4[%66, %c0_27, %c0_28] : memref<8x8x128xbf16, #tpu.memory_space<vmem>>, vector<1x8x128xbf16>
    %68 = vector.shape_cast %67 : vector<1x8x128xbf16> to vector<8x128xbf16>
    %69 = vector.shape_cast %65 : vector<8x128xbf16> to vector<1x8x128xbf16>
    tpu.vector_store %arg4[%66, %c0_27, %c0_28], %69 {strides = array<i32>} : memref<8x8x128xbf16, #tpu.memory_space<vmem>>, vector<1x8x128xbf16>,
    %c5_i32 = arith.constant 5 : i32
    %70 = arith.index_cast %c5_i32 : i32 to index
    %c0_29 = arith.constant 0 : index
    %c0_30 = arith.constant 0 : index
    %71 = vector.load %arg1[%70, %c0_29, %c0_30] : memref<8x8x128xbf16, #tpu.memory_space<vmem>>, vector<1x8x128xbf16>
    %72 = vector.shape_cast %71 : vector<1x8x128xbf16> to vector<8x128xbf16>
    %73 = arith.extf %72 : vector<8x128xbf16> to vector<8x128xf32>
    %74 = arith.truncf %64 : vector<8x128xf32> to vector<8x128xbf16>
    %cst_31 = arith.constant dense<0.000000e+00> : vector<8x128xf32>
    %75 = tpu.matmul %74, %3, %cst_31 {dimension_numbers = #tpu.dot_dimension_numbers<[1], [0], [0], [1], [0, 0, 1, 1], [], []>} : vector<8x128xbf16>, vector<128x128xbf16>, vector<8x128xf32> -> vector<8x128xf32>
    %76 = arith.addf %73, %75 : vector<8x128xf32>
    %77 = math.tanh %76 : vector<8x128xf32>
    %78 = arith.truncf %77 : vector<8x128xf32> to vector<8x128xbf16>
    %79 = arith.index_cast %c5_i32 : i32 to index
    %c0_32 = arith.constant 0 : index
    %c0_33 = arith.constant 0 : index
    %80 = vector.load %arg4[%79, %c0_32, %c0_33] : memref<8x8x128xbf16, #tpu.memory_space<vmem>>, vector<1x8x128xbf16>
    %81 = vector.shape_cast %80 : vector<1x8x128xbf16> to vector<8x128xbf16>
    %82 = vector.shape_cast %78 : vector<8x128xbf16> to vector<1x8x128xbf16>
    tpu.vector_store %arg4[%79, %c0_32, %c0_33], %82 {strides = array<i32>} : memref<8x8x128xbf16, #tpu.memory_space<vmem>>, vector<1x8x128xbf16>,
    %c6_i32 = arith.constant 6 : i32
    %83 = arith.index_cast %c6_i32 : i32 to index
    %c0_34 = arith.constant 0 : index
    %c0_35 = arith.constant 0 : index
    %84 = vector.load %arg1[%83, %c0_34, %c0_35] : memref<8x8x128xbf16, #tpu.memory_space<vmem>>, vector<1x8x128xbf16>
    %85 = vector.shape_cast %84 : vector<1x8x128xbf16> to vector<8x128xbf16>
    %86 = arith.extf %85 : vector<8x128xbf16> to vector<8x128xf32>
    %87 = arith.truncf %77 : vector<8x128xf32> to vector<8x128xbf16>
    %cst_36 = arith.constant dense<0.000000e+00> : vector<8x128xf32>
    %88 = tpu.matmul %87, %3, %cst_36 {dimension_numbers = #tpu.dot_dimension_numbers<[1], [0], [0], [1], [0, 0, 1, 1], [], []>} : vector<8x128xbf16>, vector<128x128xbf16>, vector<8x128xf32> -> vector<8x128xf32>
    %89 = arith.addf %86, %88 : vector<8x128xf32>
    %90 = math.tanh %89 : vector<8x128xf32>
    %91 = arith.truncf %90 : vector<8x128xf32> to vector<8x128xbf16>
    %92 = arith.index_cast %c6_i32 : i32 to index
    %c0_37 = arith.constant 0 : index
    %c0_38 = arith.constant 0 : index
    %93 = vector.load %arg4[%92, %c0_37, %c0_38] : memref<8x8x128xbf16, #tpu.memory_space<vmem>>, vector<1x8x128xbf16>
    %94 = vector.shape_cast %93 : vector<1x8x128xbf16> to vector<8x128xbf16>
    %95 = vector.shape_cast %91 : vector<8x128xbf16> to vector<1x8x128xbf16>
    tpu.vector_store %arg4[%92, %c0_37, %c0_38], %95 {strides = array<i32>} : memref<8x8x128xbf16, #tpu.memory_space<vmem>>, vector<1x8x128xbf16>,
    %c7_i32 = arith.constant 7 : i32
    %96 = arith.index_cast %c7_i32 : i32 to index
    %c0_39 = arith.constant 0 : index
    %c0_40 = arith.constant 0 : index
    %97 = vector.load %arg1[%96, %c0_39, %c0_40] : memref<8x8x128xbf16, #tpu.memory_space<vmem>>, vector<1x8x128xbf16>
    %98 = vector.shape_cast %97 : vector<1x8x128xbf16> to vector<8x128xbf16>
    %99 = arith.extf %98 : vector<8x128xbf16> to vector<8x128xf32>
    %100 = arith.truncf %90 : vector<8x128xf32> to vector<8x128xbf16>
    %cst_41 = arith.constant dense<0.000000e+00> : vector<8x128xf32>
    %101 = tpu.matmul %100, %3, %cst_41 {dimension_numbers = #tpu.dot_dimension_numbers<[1], [0], [0], [1], [0, 0, 1, 1], [], []>} : vector<8x128xbf16>, vector<128x128xbf16>, vector<8x128xf32> -> vector<8x128xf32>
    %102 = arith.addf %99, %101 : vector<8x128xf32>
    %103 = math.tanh %102 : vector<8x128xf32>
    %104 = arith.truncf %103 : vector<8x128xf32> to vector<8x128xbf16>
    %105 = arith.index_cast %c7_i32 : i32 to index
    %c0_42 = arith.constant 0 : index
    %c0_43 = arith.constant 0 : index
    %106 = vector.load %arg4[%105, %c0_42, %c0_43] : memref<8x8x128xbf16, #tpu.memory_space<vmem>>, vector<1x8x128xbf16>
    %107 = vector.shape_cast %106 : vector<1x8x128xbf16> to vector<8x128xbf16>
    %108 = vector.shape_cast %104 : vector<8x128xbf16> to vector<1x8x128xbf16>
    tpu.vector_store %arg4[%105, %c0_42, %c0_43], %108 {strides = array<i32>} : memref<8x8x128xbf16, #tpu.memory_space<vmem>>, vector<1x8x128xbf16>,
    %c8_i32 = arith.constant 8 : i32
    %c0_44 = arith.constant 0 : index
    %c0_45 = arith.constant 0 : index
    %109 = vector.load %arg5[%c0_44, %c0_45] : memref<8x128xf32, #tpu.memory_space<vmem>>, vector<8x128xf32>
    tpu.vector_store %arg5[%c0_44, %c0_45], %103 {strides = array<i32>} : memref<8x128xf32, #tpu.memory_space<vmem>>, vector<8x128xf32>,
    return
  }
  func.func @transform_0(%arg0: i32) -> (i32, i32, i32) {
    %c0_i32 = arith.constant 0 : i32
    %c0_i32_0 = arith.constant 0 : i32
    %c0_i32_1 = arith.constant 0 : i32
    return %arg0, %c0_i32, %c0_i32_0 : i32, i32, i32
  }
  func.func @transform_1(%arg0: i32) -> (i32, i32) {
    %c0_i32 = arith.constant 0 : i32
    %c0_i32_0 = arith.constant 0 : i32
    %c0_i32_1 = arith.constant 0 : i32
    return %c0_i32, %c0_i32_0 : i32, i32
  }
  func.func @transform_2(%arg0: i32) -> (i32, i32) {
    %c0_i32 = arith.constant 0 : i32
    %c0_i32_0 = arith.constant 0 : i32
    %c0_i32_1 = arith.constant 0 : i32
    return %c0_i32, %c0_i32_0 : i32, i32
  }
  func.func @transform_3(%arg0: i32) -> (i32, i32, i32) {
    %c0_i32 = arith.constant 0 : i32
    %c0_i32_0 = arith.constant 0 : i32
    %c0_i32_1 = arith.constant 0 : i32
    return %arg0, %c0_i32, %c0_i32_0 : i32, i32, i32
  }
  func.func @transform_4(%arg0: i32) -> (i32, i32) {
    %c0_i32 = arith.constant 0 : i32
    %c0_i32_0 = arith.constant 0 : i32
    %c0_i32_1 = arith.constant 0 : i32
    return %c0_i32, %c0_i32_0 : i32, i32
  }
}

</mosaic_0001>

<bundles_post_ra>
// kernel: tpu_custom_call.1
= control target key start
LH: loop header
LB: loop body
LE: loop exit
PB: predicated region body
PF: predicated region fallthrough
CT: control target
= control target key end

     0   :  { %10 = vsyncpa [#allocation3], 0  ;;  %s1213_s0 = inlined_call_operand.hbm [shape: bf16[8,8,128], index: 0, kind: input, shape index: {}]   ;;  %s1214_s1 = inlined_call_operand.hbm [shape: f32[8,128], index: 1, kind: input, shape index: {}]   ;;  %s1215_s2 = inlined_call_operand.hbm [shape: bf16[128,128], index: 2, kind: input, shape index: {}]   ;;  %s1216_s3 = inlined_call_operand.hbm [shape: bf16[8,8,128], index: 3, kind: output, shape index: {0}]   ;;  %s1217_s4 = inlined_call_operand.hbm [shape: f32[8,128], index: 4, kind: output, shape index: {1}]  }
   0x1   :  { %11 = vsyncpa [#allocation6], 0 }
   0x2   :  { %12 = vsyncpa [#allocation4], 0 }
   0x3   :  { %13 = vsyncpa [#allocation10], 0  ;;  %s936_s15 = smov [#allocation5]   ;;  %s937_s17 = smov [#allocation2]  }
   0x4   :  { %s32_s16 = sshll.u32 %s936_s15, 4  ;;  %s19_s18 = sshll.u32 %s937_s17, 4  ;;  %s33_s16 = int_to_ptr.vmem [resolvable:$true] %s32_s16  ;;  %s970_s18 = int_to_ptr.vmem [resolvable:$true] %s19_s18 }
   0x5   :  { %s818_s21 = scalar_lea.hbm %s1214_s1, 128 }
   0x6   :  { %p819_p0 = scmp.ne.s32.totalorder %s1214_s1, %s818_s21  ;;  %p822_p1 = scmp.lt.u32.totalorder %s818_s21, %s1214_s1 }
   0x8   :  { %p824_p2 = pnand %p822_p1, %p819_p0 }
   0xa   :  { %827 = shalt.err (!%p824_p2)
}
   0xb   :  { %s828_s26 = scalar_lea.vmem %s33_s16, 128  ;;  %p833_p4 = scmp.lt.s32.totalorder %s33_s16, %s33_s16 }
   0xc   :  { %p829_p3 = scmp.ne.s32.totalorder %s33_s16, %s828_s26  ;;  %p834_p5 = scmp.lt.s32.totalorder %s828_s26, %s828_s26 }
   0xe   :  { %p835_p6 = por %p834_p5, %p833_p4 }
  0x10   :  { %p836_p7 = pnand %p835_p6, %p829_p3 }
  0x12   :  { %839 = shalt.err (!%p836_p7)
}
  0x13   :  { %35 = dma.hbm_to_vmem [thread:$0]  %s1214_s1, 128, %s33_s16, [#allocation6]  }
  0x14   :  { %s840_s5 = scalar_lea.hbm %s1213_s0, 512 }
  0x15   :  { %p841_p8 = scmp.ne.s32.totalorder %s1213_s0, %s840_s5  ;;  %p844_p9 = scmp.lt.u32.totalorder %s840_s5, %s1213_s0 }
  0x17   :  { %p846_p10 = pnand %p844_p9, %p841_p8 }
  0x19   :  { %849 = shalt.err (!%p846_p10)
}
  0x1a   :  { %s850_s10 = scalar_lea.vmem %s970_s18, 512  ;;  %p855_p12 = scmp.lt.s32.totalorder %s970_s18, %s970_s18 }
  0x1b   :  { %p851_p11 = scmp.ne.s32.totalorder %s970_s18, %s850_s10  ;;  %p856_p13 = scmp.lt.s32.totalorder %s850_s10, %s850_s10 }
  0x1d   :  { %p857_p0 = por %p856_p13, %p855_p12 }
  0x1f   :  { %p858_p1 = pnand %p857_p0, %p851_p11 }
  0x21   :  { %861 = shalt.err (!%p858_p1)
}
  0x22   :  { %s938_s1 = smov 64   ;;  %s939_s11 = smov 4  }
  0x23   :  { %25 = dma.hbm_to_vmem [thread:$0]  %s1213_s0, 512, %s970_s18, [#allocation3], %s938_s1, %s938_s1, %s939_s11  }
  0x24   :  { %s940_s14 = smov [#allocation7]   ;;  %s862_s19 = scalar_lea.hbm %s1215_s2, 1024 }
  0x25   :  { %s41_s15 = sshll.u32 %s940_s14, 4  ;;  %p863_p2 = scmp.ne.s32.totalorder %s1215_s2, %s862_s19  ;;  %s42_s15 = int_to_ptr.vmem [resolvable:$true] %s41_s15 }
  0x26   :  { %p866_p3 = scmp.lt.u32.totalorder %s862_s19, %s1215_s2 }
  0x28   :  { %p868_p4 = pnand %p866_p3, %p863_p2 }
  0x2a   :  { %871 = shalt.err (!%p868_p4)
}
  0x2b   :  { %s872_s24 = scalar_lea.vmem %s42_s15, 1024  ;;  %p877_p6 = scmp.lt.s32.totalorder %s42_s15, %s42_s15 }
  0x2c   :  { %p873_p5 = scmp.ne.s32.totalorder %s42_s15, %s872_s24  ;;  %p878_p7 = scmp.lt.s32.totalorder %s872_s24, %s872_s24 }
  0x2e   :  { %p879_p8 = por %p878_p7, %p877_p6 }
  0x30   :  { %p880_p9 = pnand %p879_p8, %p873_p5 }
  0x32   :  { %883 = shalt.err (!%p880_p9)
}
  0x33   :  { %47 = dma.hbm_to_vmem [thread:$0]  %s1215_s2, 1024, %s42_s15, [#allocation6], %s938_s1, %s938_s1, %s939_s11  }
  0x34   :  { %928 = dma.done.wait [#allocation3], 512  }
  0x35   :  { %929 = vsyncadd [#allocation3], 4294966784 }
  0x36   :  { %930 = dma.done.wait [#allocation6], 1152  }
  0x37   :  { %931 = vsyncadd [#allocation6], 4294966144  ;;  %v941_v0 = vmov 0.0   ;;  %vm942_vm0 = vmmov 0   ;;  %v1025_v1 = vld [vmem:[#allocation7] sm:$0xff]   ;;  %v1028_v2 = vld [vmem:[#allocation7 + $0x8] sm:$0xff]  }
  0x38   :  { %625 = vmatprep.subr.bf16.mxu0 %v941_v0  ;;  %641 = vmatprep.mubr.msk.bf16.mxu0 %vm942_vm0, %v941_v0  ;;  %v1034_v3 = vld [vmem:[#allocation7 + $0x10] sm:$0xff]   ;;  %v1040_v4 = vld [vmem:[#allocation7 + $0x18] sm:$0xff]   ;;  %v1046_v5 = vld [vmem:[#allocation7 + $0x20] sm:$0xff]   ;;  %s943_s2 = smov [#allocation9]   ;;  %s944_s26 = smov [#allocation8]  }
  0x39   :  { %645 = vmatprep.subr.bf16.mxu1 %v941_v0  ;;  %661 = vmatprep.mubr.msk.bf16.mxu1 %vm942_vm0, %v941_v0  ;;  %v1052_v6 = vld [vmem:[#allocation7 + $0x28] sm:$0xff]   ;;  %v1058_v7 = vld [vmem:[#allocation7 + $0x30] sm:$0xff]   ;;  %v1064_v8 = vld [vmem:[#allocation7 + $0x38] sm:$0xff]   ;;  %s531_s25 = sshll.u32 %s943_s2, 4  ;;  %s518_s27 = sshll.u32 %s944_s26, 4  ;;  %s532_s25 = int_to_ptr.vmem [resolvable:$true] %s531_s25  ;;  %s1179_s27 = int_to_ptr.vmem [resolvable:$true] %s518_s27 }
  0x3a   :  { %626 = vmatpush3.bf16.msra.mxu0 %v1025_v1  ;;  %646 = vmatpush3.bf16.msra.mxu1 %v1025_v1  ;;  %v62_v9 = vld [vmem:[#allocation5] sm:$0xff]  ;;  %v225_v28 = vld [vmem:[#allocation2 + $0x8] sm:$0xff]   ;;  %v321_v45 = vld [vmem:[#allocation2 + $0x10] sm:$0xff]   ;;  %s884_s28 = scalar_lea.vmem %s532_s25, 128  ;;  %p889_p11 = scmp.lt.s32.totalorder %s532_s25, %s532_s25 }
  0x3b   :  { %627 = vmatprep.subr.bf16.mxu0 %v941_v0  ;;  %647 = vmatprep.subr.bf16.mxu1 %v941_v0  ;;  %v83_v10 = vpack.c.bf16 %v62_v9, %v62_v9  ;;  %v81_v11 = vld [vmem:[#allocation2] sm:$0xff]   ;;  %v226_v29 = vunpack.c.l.bf16 %v225_v28  ;;  %v274_v37 = vunpack.c.h.bf16 %v225_v28  ;;  %v322_v46 = vunpack.c.l.bf16 %v321_v45  ;;  %v417_v62 = vld [vmem:[#allocation2 + $0x18] sm:$0xff]   ;;  %p885_p10 = scmp.ne.s32.totalorder %s532_s25, %s884_s28  ;;  %p890_p12 = scmp.lt.s32.totalorder %s884_s28, %s884_s28 }
  0x3c   :  { %v82_v12 = vunpack.c.l.bf16 %v81_v11  ;;  %v178_v20 = vunpack.c.h.bf16 %v81_v11  ;;  %v370_v54 = vunpack.c.h.bf16 %v321_v45  ;;  %v418_v63 = vunpack.c.l.bf16 %v417_v62 }
  0x3d   :  { %p891_p13 = por %p890_p12, %p889_p11 }
  0x3e   :  { %628 = vmatpush3.bf16.msra.mxu0 %v1028_v2  ;;  %648 = vmatpush3.bf16.msra.mxu1 %v1028_v2 }
  0x3f   :  { %629 = vmatprep.subr.bf16.mxu0 %v941_v0  ;;  %649 = vmatprep.subr.bf16.mxu1 %v941_v0  ;;  %p892_p0 = pnand %p891_p13, %p885_p10 }
  0x42   :  { %630 = vmatpush3.bf16.msra.mxu0 %v1034_v3  ;;  %650 = vmatpush3.bf16.msra.mxu1 %v1034_v3 }
  0x43   :  { %631 = vmatprep.subr.bf16.mxu0 %v941_v0  ;;  %651 = vmatprep.subr.bf16.mxu1 %v941_v0 }
  0x46   :  { %632 = vmatpush3.bf16.msra.mxu0 %v1040_v4  ;;  %652 = vmatpush3.bf16.msra.mxu1 %v1040_v4 }
  0x47   :  { %633 = vmatprep.subr.bf16.mxu0 %v941_v0  ;;  %653 = vmatprep.subr.bf16.mxu1 %v941_v0 }
  0x4a   :  { %634 = vmatpush3.bf16.msra.mxu0 %v1046_v5  ;;  %654 = vmatpush3.bf16.msra.mxu1 %v1046_v5 }
  0x4b   :  { %635 = vmatprep.subr.bf16.mxu0 %v941_v0  ;;  %655 = vmatprep.subr.bf16.mxu1 %v941_v0 }
  0x4e   :  { %636 = vmatpush3.bf16.msra.mxu0 %v1052_v6  ;;  %656 = vmatpush3.bf16.msra.mxu1 %v1052_v6 }
  0x4f   :  { %637 = vmatprep.subr.bf16.mxu0 %v941_v0  ;;  %657 = vmatprep.subr.bf16.mxu1 %v941_v0 }
  0x52   :  { %638 = vmatpush3.bf16.msra.mxu0 %v1058_v7  ;;  %658 = vmatpush3.bf16.msra.mxu1 %v1058_v7 }
  0x53   :  { %639 = vmatprep.subr.bf16.mxu0 %v941_v0  ;;  %659 = vmatprep.subr.bf16.mxu1 %v941_v0 }
  0x56   :  { %640 = vmatpush3.bf16.msra.mxu0 %v1064_v8  ;;  %660 = vmatpush3.bf16.msra.mxu1 %v1064_v8 }
  0x57   :  { %665 = vmatprep.subr.bf16.mxu0 %v941_v0  ;;  %685 = vmatprep.subr.bf16.mxu1 %v941_v0 }
  0x59   :  { %642 = vmatmul.mubr.bf16.vlgmr.msra.gmra.mrb[0].mxu0 %v83_v10 }
  0x5a   :  { %666 = vmatpush3.bf16.msra.mxu0 %v1025_v1  ;;  %681 = vmatprep.mubr.msk.bf16.mxu0 %vm942_vm0, %v941_v0 }
  0x5b   :  { %667 = vmatprep.subr.bf16.mxu0 %v941_v0 }
  0x5e   :  { %668 = vmatpush3.bf16.msra.mxu0 %v1028_v2 }
  0x5f   :  { %669 = vmatprep.subr.bf16.mxu0 %v941_v0 }
  0x62   :  { %670 = vmatpush3.bf16.msra.mxu0 %v1034_v3 }
  0x63   :  { %671 = vmatprep.subr.bf16.mxu0 %v941_v0 }
  0x66   :  { %672 = vmatpush3.bf16.msra.mxu0 %v1040_v4 }
  0x67   :  { %673 = vmatprep.subr.bf16.mxu0 %v941_v0 }
  0x6a   :  { %674 = vmatpush3.bf16.msra.mxu0 %v1046_v5 }
  0x6b   :  { %675 = vmatprep.subr.bf16.mxu0 %v941_v0 }
  0x6e   :  { %676 = vmatpush3.bf16.msra.mxu0 %v1052_v6 }
  0x6f   :  { %677 = vmatprep.subr.bf16.mxu0 %v941_v0 }
  0x72   :  { %678 = vmatpush3.bf16.msra.mxu0 %v1058_v7 }
  0x73   :  { %679 = vmatprep.subr.bf16.mxu0 %v941_v0 }
  0x76   :  { %680 = vmatpush3.bf16.msra.mxu0 %v1064_v8 }
  0x77   :  { %705 = vmatprep.subr.bf16.mxu0 %v941_v0 }
 0x12c   :  { %v166_v13 = vpop.f32.mrb[0].mxu0 }
 0x12d   :  { %v172_v14 = vadd.f32 %v166_v13, %v82_v12  ;;  %v643_v15 = vpop.f32.mrb[1].mxu0 }
 0x12e   :  { %v169_v16 = vpop.f32.mrb[2].mxu0 }
 0x12f   :  { %802 = vtanh.f32 %v172_v14  ;;  %v644_v17 = vpop.f32.mrb[3].mxu0 }
 0x139   :  { %v803_v18 = vpop.eup %802 }
 0x13a   :  { %v174_v19 = vpack.c.bf16 %v803_v18, %v803_v18 }
 0x13c   :  { %175 = vst [vmem:[#allocation8] sm:$0xf] %v174_v19  ;;  %662 = vmatmul.mubr.bf16.vlgmr.msra.gmra.mrb[0].mxu1 %v174_v19 }
 0x13d   :  { %686 = vmatpush3.bf16.msra.mxu1 %v1025_v1  ;;  %701 = vmatprep.mubr.msk.bf16.mxu1 %vm942_vm0, %v941_v0 }
 0x13e   :  { %687 = vmatprep.subr.bf16.mxu1 %v941_v0 }
 0x141   :  { %688 = vmatpush3.bf16.msra.mxu1 %v1028_v2 }
 0x142   :  { %689 = vmatprep.subr.bf16.mxu1 %v941_v0 }
 0x145   :  { %690 = vmatpush3.bf16.msra.mxu1 %v1034_v3 }
 0x146   :  { %691 = vmatprep.subr.bf16.mxu1 %v941_v0 }
 0x149   :  { %692 = vmatpush3.bf16.msra.mxu1 %v1040_v4 }
 0x14a   :  { %693 = vmatprep.subr.bf16.mxu1 %v941_v0 }
 0x14d   :  { %694 = vmatpush3.bf16.msra.mxu1 %v1046_v5 }
 0x14e   :  { %695 = vmatprep.subr.bf16.mxu1 %v941_v0 }
 0x151   :  { %696 = vmatpush3.bf16.msra.mxu1 %v1052_v6 }
 0x152   :  { %697 = vmatprep.subr.bf16.mxu1 %v941_v0 }
 0x155   :  { %698 = vmatpush3.bf16.msra.mxu1 %v1058_v7 }
 0x156   :  { %699 = vmatprep.subr.bf16.mxu1 %v941_v0 }
 0x159   :  { %700 = vmatpush3.bf16.msra.mxu1 %v1064_v8 }
 0x15a   :  { %725 = vmatprep.subr.bf16.mxu1 %v941_v0 }
 0x20f   :  { %v213_v21 = vpop.f32.mrb[0].mxu1 }
 0x210   :  { %v219_v22 = vadd.f32 %v213_v21, %v178_v20  ;;  %v663_v23 = vpop.f32.mrb[1].mxu1 }
 0x211   :  { %v216_v24 = vpop.f32.mrb[2].mxu1 }
 0x212   :  { %804 = vtanh.f32 %v219_v22  ;;  %v664_v25 = vpop.f32.mrb[3].mxu1 }
 0x21c   :  { %v805_v26 = vpop.eup %804 }
 0x21d   :  { %v221_v27 = vpack.c.bf16 %v805_v26, %v805_v26 }
 0x21f   :  { %223 = vst [vmem:[#allocation8 + $0x4] sm:$0xf] %v221_v27  ;;  %682 = vmatmul.mubr.bf16.vlgmr.msra.gmra.mrb[4].mxu0 %v221_v27 }
 0x220   :  { %706 = vmatpush3.bf16.msra.mxu0 %v1025_v1  ;;  %721 = vmatprep.mubr.msk.bf16.mxu0 %vm942_vm0, %v941_v0 }
 0x221   :  { %707 = vmatprep.subr.bf16.mxu0 %v941_v0 }
 0x224   :  { %708 = vmatpush3.bf16.msra.mxu0 %v1028_v2 }
 0x225   :  { %709 = vmatprep.subr.bf16.mxu0 %v941_v0 }
 0x228   :  { %710 = vmatpush3.bf16.msra.mxu0 %v1034_v3 }
 0x229   :  { %711 = vmatprep.subr.bf16.mxu0 %v941_v0 }
 0x22c   :  { %712 = vmatpush3.bf16.msra.mxu0 %v1040_v4 }
 0x22d   :  { %713 = vmatprep.subr.bf16.mxu0 %v941_v0 }
 0x230   :  { %714 = vmatpush3.bf16.msra.mxu0 %v1046_v5 }
 0x231   :  { %715 = vmatprep.subr.bf16.mxu0 %v941_v0 }
 0x234   :  { %716 = vmatpush3.bf16.msra.mxu0 %v1052_v6 }
 0x235   :  { %717 = vmatprep.subr.bf16.mxu0 %v941_v0 }
 0x238   :  { %718 = vmatpush3.bf16.msra.mxu0 %v1058_v7 }
 0x239   :  { %719 = vmatprep.subr.bf16.mxu0 %v941_v0 }
 0x23c   :  { %720 = vmatpush3.bf16.msra.mxu0 %v1064_v8 }
 0x23d   :  { %745 = vmatprep.subr.bf16.mxu0 %v941_v0 }
 0x2f2   :  { %v261_v30 = vpop.f32.mrb[4].mxu0 }
 0x2f3   :  { %v267_v31 = vadd.f32 %v261_v30, %v226_v29  ;;  %v683_v32 = vpop.f32.mrb[5].mxu0 }
 0x2f4   :  { %v264_v33 = vpop.f32.mrb[6].mxu0 }
 0x2f5   :  { %806 = vtanh.f32 %v267_v31  ;;  %v684_v34 = vpop.f32.mrb[7].mxu0 }
 0x2ff   :  { %v807_v35 = vpop.eup %806 }
 0x300   :  { %v269_v36 = vpack.c.bf16 %v807_v35, %v807_v35 }
 0x302   :  { %271 = vst [vmem:[#allocation8 + $0x8] sm:$0xf] %v269_v36  ;;  %702 = vmatmul.mubr.bf16.vlgmr.msra.gmra.mrb[4].mxu1 %v269_v36 }
 0x303   :  { %726 = vmatpush3.bf16.msra.mxu1 %v1025_v1  ;;  %741 = vmatprep.mubr.msk.bf16.mxu1 %vm942_vm0, %v941_v0 }
 0x304   :  { %727 = vmatprep.subr.bf16.mxu1 %v941_v0 }
 0x307   :  { %728 = vmatpush3.bf16.msra.mxu1 %v1028_v2 }
 0x308   :  { %729 = vmatprep.subr.bf16.mxu1 %v941_v0 }
 0x30b   :  { %730 = vmatpush3.bf16.msra.mxu1 %v1034_v3 }
 0x30c   :  { %731 = vmatprep.subr.bf16.mxu1 %v941_v0 }
 0x30f   :  { %732 = vmatpush3.bf16.msra.mxu1 %v1040_v4 }
 0x310   :  { %733 = vmatprep.subr.bf16.mxu1 %v941_v0 }
 0x313   :  { %734 = vmatpush3.bf16.msra.mxu1 %v1046_v5 }
 0x314   :  { %735 = vmatprep.subr.bf16.mxu1 %v941_v0 }
 0x317   :  { %736 = vmatpush3.bf16.msra.mxu1 %v1052_v6 }
 0x318   :  { %737 = vmatprep.subr.bf16.mxu1 %v941_v0 }
 0x31b   :  { %738 = vmatpush3.bf16.msra.mxu1 %v1058_v7 }
 0x31c   :  { %739 = vmatprep.subr.bf16.mxu1 %v941_v0 }
 0x31f   :  { %740 = vmatpush3.bf16.msra.mxu1 %v1064_v8 }
 0x320   :  { %765 = vmatprep.subr.bf16.mxu1 %v941_v0 }
 0x3d5   :  { %v309_v38 = vpop.f32.mrb[4].mxu1 }
 0x3d6   :  { %v315_v39 = vadd.f32 %v309_v38, %v274_v37  ;;  %v703_v40 = vpop.f32.mrb[5].mxu1 }
 0x3d7   :  { %v312_v41 = vpop.f32.mrb[6].mxu1 }
 0x3d8   :  { %808 = vtanh.f32 %v315_v39  ;;  %v704_v42 = vpop.f32.mrb[7].mxu1 }
 0x3e2   :  { %v809_v43 = vpop.eup %808 }
 0x3e3   :  { %v317_v44 = vpack.c.bf16 %v809_v43, %v809_v43 }
 0x3e5   :  { %319 = vst [vmem:[#allocation8 + $0xc] sm:$0xf] %v317_v44  ;;  %722 = vmatmul.mubr.bf16.vlgmr.msra.gmra.mrb[8].mxu0 %v317_v44 }
 0x3e6   :  { %746 = vmatpush3.bf16.msra.mxu0 %v1025_v1  ;;  %761 = vmatprep.mubr.msk.bf16.mxu0 %vm942_vm0, %v941_v0 }
 0x3e7   :  { %747 = vmatprep.subr.bf16.mxu0 %v941_v0 }
 0x3ea   :  { %748 = vmatpush3.bf16.msra.mxu0 %v1028_v2 }
 0x3eb   :  { %749 = vmatprep.subr.bf16.mxu0 %v941_v0 }
 0x3ee   :  { %750 = vmatpush3.bf16.msra.mxu0 %v1034_v3 }
 0x3ef   :  { %751 = vmatprep.subr.bf16.mxu0 %v941_v0 }
 0x3f2   :  { %752 = vmatpush3.bf16.msra.mxu0 %v1040_v4 }
 0x3f3   :  { %753 = vmatprep.subr.bf16.mxu0 %v941_v0 }
 0x3f6   :  { %754 = vmatpush3.bf16.msra.mxu0 %v1046_v5 }
 0x3f7   :  { %755 = vmatprep.subr.bf16.mxu0 %v941_v0 }
 0x3fa   :  { %756 = vmatpush3.bf16.msra.mxu0 %v1052_v6 }
 0x3fb   :  { %757 = vmatprep.subr.bf16.mxu0 %v941_v0 }
 0x3fe   :  { %758 = vmatpush3.bf16.msra.mxu0 %v1058_v7 }
 0x3ff   :  { %759 = vmatprep.subr.bf16.mxu0 %v941_v0 }
 0x402   :  { %760 = vmatpush3.bf16.msra.mxu0 %v1064_v8 }
 0x4b8   :  { %v357_v47 = vpop.f32.mrb[8].mxu0 }
 0x4b9   :  { %v363_v48 = vadd.f32 %v357_v47, %v322_v46  ;;  %v723_v49 = vpop.f32.mrb[9].mxu0 }
 0x4ba   :  { %v360_v50 = vpop.f32.mrb[10].mxu0 }
 0x4bb   :  { %810 = vtanh.f32 %v363_v48  ;;  %v724_v51 = vpop.f32.mrb[11].mxu0 }
 0x4c5   :  { %v811_v52 = vpop.eup %810 }
 0x4c6   :  { %v365_v53 = vpack.c.bf16 %v811_v52, %v811_v52 }
 0x4c8   :  { %367 = vst [vmem:[#allocation8 + $0x10] sm:$0xf] %v365_v53  ;;  %742 = vmatmul.mubr.bf16.vlgmr.msra.gmra.mrb[8].mxu1 %v365_v53 }
 0x4c9   :  { %766 = vmatpush3.bf16.msra.mxu1 %v1025_v1  ;;  %781 = vmatprep.mubr.msk.bf16.mxu1 %vm942_vm0, %v941_v0 }
 0x4ca   :  { %767 = vmatprep.subr.bf16.mxu1 %v941_v0 }
 0x4cd   :  { %768 = vmatpush3.bf16.msra.mxu1 %v1028_v2 }
 0x4ce   :  { %769 = vmatprep.subr.bf16.mxu1 %v941_v0 }
 0x4d1   :  { %770 = vmatpush3.bf16.msra.mxu1 %v1034_v3 }
 0x4d2   :  { %771 = vmatprep.subr.bf16.mxu1 %v941_v0 }
 0x4d5   :  { %772 = vmatpush3.bf16.msra.mxu1 %v1040_v4 }
 0x4d6   :  { %773 = vmatprep.subr.bf16.mxu1 %v941_v0 }
 0x4d9   :  { %774 = vmatpush3.bf16.msra.mxu1 %v1046_v5 }
 0x4da   :  { %775 = vmatprep.subr.bf16.mxu1 %v941_v0 }
 0x4dd   :  { %776 = vmatpush3.bf16.msra.mxu1 %v1052_v6 }
 0x4de   :  { %777 = vmatprep.subr.bf16.mxu1 %v941_v0 }
 0x4e1   :  { %778 = vmatpush3.bf16.msra.mxu1 %v1058_v7  ;;  %v466_v7 = vunpack.c.h.bf16 %v417_v62 }
 0x4e2   :  { %779 = vmatprep.subr.bf16.mxu1 %v941_v0 }
 0x4e5   :  { %780 = vmatpush3.bf16.msra.mxu1 %v1064_v8 }
 0x59b   :  { %v405_v55 = vpop.f32.mrb[8].mxu1 }
 0x59c   :  { %v411_v56 = vadd.f32 %v405_v55, %v370_v54  ;;  %v743_v57 = vpop.f32.mrb[9].mxu1 }
 0x59d   :  { %v408_v58 = vpop.f32.mrb[10].mxu1 }
 0x59e   :  { %812 = vtanh.f32 %v411_v56  ;;  %v744_v59 = vpop.f32.mrb[11].mxu1 }
 0x5a8   :  { %v813_v60 = vpop.eup %812 }
 0x5a9   :  { %v413_v61 = vpack.c.bf16 %v813_v60, %v813_v60 }
 0x5ab   :  { %415 = vst [vmem:[#allocation8 + $0x14] sm:$0xf] %v413_v61  ;;  %762 = vmatmul.mubr.bf16.vlgmr.msra.gmra.mrb[12].mxu0 %v413_v61 }
 0x67e   :  { %v453_v1 = vpop.f32.mrb[12].mxu0 }
 0x67f   :  { %v459_v2 = vadd.f32 %v453_v1, %v418_v63  ;;  %v763_v3 = vpop.f32.mrb[13].mxu0 }
 0x680   :  { %v456_v4 = vpop.f32.mrb[14].mxu0 }
 0x681   :  { %814 = vtanh.f32 %v459_v2  ;;  %v764_v0 = vpop.f32.mrb[15].mxu0 }
 0x68b   :  { %v815_v5 = vpop.eup %814 }
 0x68c   :  { %v461_v6 = vpack.c.bf16 %v815_v5, %v815_v5 }
 0x68e   :  { %463 = vst [vmem:[#allocation8 + $0x18] sm:$0xf] %v461_v6  ;;  %782 = vmatmul.mubr.bf16.vlgmr.msra.gmra.mrb[12].mxu1 %v461_v6 }
 0x761   :  { %v501_v8 = vpop.f32.mrb[12].mxu1 }
 0x762   :  { %v507_v9 = vadd.f32 %v501_v8, %v466_v7  ;;  %v783_v10 = vpop.f32.mrb[13].mxu1 }
 0x763   :  { %v504_v11 = vpop.f32.mrb[14].mxu1 }
 0x764   :  { %816 = vtanh.f32 %v507_v9  ;;  %v784_v12 = vpop.f32.mrb[15].mxu1 }
 0x76e   :  { %v817_v13 = vpop.eup %816 }
 0x76f   :  { %v509_v14 = vpack.c.bf16 %v817_v13, %v817_v13  ;;  %512 = vst [vmem:[#allocation9] sm:$0xff] %v817_v13 }
 0x770   :  { %895 = shalt.err (!%p892_p0)
}
 0x771   :  { %s896_s5 = scalar_lea.hbm %s1217_s4, 128 }
 0x772   :  { %p897_p1 = scmp.ne.s32.totalorder %s1217_s4, %s896_s5  ;;  %p900_p2 = scmp.lt.u32.totalorder %s896_s5, %s1217_s4 }
 0x774   :  { %p902_p3 = pnand %p900_p2, %p897_p1 }
 0x776   :  { %905 = shalt.err (!%p902_p3)
}
 0x777   :  { %534 = dma.vmem_to_hbm [thread:$0]  %s532_s25, 128, %s1217_s4, [#allocation10]   ;;  %511 = vst [vmem:[#allocation8 + $0x1c] sm:$0xf] %v509_v14 }
 0x778   :  { %s906_s13 = scalar_lea.vmem %s1179_s27, 512  ;;  %p911_p5 = scmp.lt.s32.totalorder %s1179_s27, %s1179_s27 }
 0x779   :  { %p907_p4 = scmp.ne.s32.totalorder %s1179_s27, %s906_s13  ;;  %p912_p6 = scmp.lt.s32.totalorder %s906_s13, %s906_s13 }
 0x77b   :  { %p913_p7 = por %p912_p6, %p911_p5 }
 0x77d   :  { %p914_p8 = pnand %p913_p7, %p907_p4 }
 0x77f   :  { %917 = shalt.err (!%p914_p8)
}
 0x780   :  { %s918_s16 = scalar_lea.hbm %s1216_s3, 512 }
 0x781   :  { %p919_p9 = scmp.ne.s32.totalorder %s1216_s3, %s918_s16  ;;  %p922_p10 = scmp.lt.u32.totalorder %s918_s16, %s1216_s3 }
 0x783   :  { %p924_p11 = pnand %p922_p10, %p919_p9 }
 0x785   :  { %927 = shalt.err (!%p924_p11)
}
 0x786   :  { %524 = dma.vmem_to_hbm [thread:$0]  %s1179_s27, 512, %s1216_s3, [#allocation4], %s938_s1, %s938_s1, %s939_s11  }
 0x787   :  { %932 = dma.done.wait [#allocation4], 512  }
 0x788   :  { %933 = vsyncadd [#allocation4], 4294966784 }
 0x789   :  { %934 = dma.done.wait [#allocation10], 128  }
 0x78a   :  { %935 = vsyncadd [#allocation10], 4294967168 }
 0x78b   :  { %541 = vsyncpa [#allocation3], 1 }
 0x78c   :  { %542 = vsyncpa [#allocation6], 1 }
 0x78d   :  { %543 = vsyncpa [#allocation4], 1 }
 0x78e   :  { %544 = vsyncpa [#allocation10], 1 }

</bundles_post_ra>
